<compile_context>
chip_gen: v7x
topology: tpu7x:2x2x1
jax: 0.10.0
libtpu: 0.0.40
codegen_flags: <defaults>
</compile_context>

<pallas_src>
import functools

import jax
import jax.numpy as jnp
from jax.experimental import pallas as pl
from jax.experimental.pallas import tpu as pltpu


def _round_up(x, m):
    return ((x + m - 1) // m) * m


def critic_mlp_kernel(s_ref, a_ref, w1s_ref, w1a_ref, b1_ref,
                      w2_ref, b2_ref, w3r_ref, b3_ref, o_ref):
    # s_ref: (TILE_B, ds)   a_ref: (TILE_B, da)
    # w1s: (ds, H)  w1a: (da, H)  w2: (H, H)  w3r: (1, H)  biases: (1, H)/(1, 1)
    cdt = w1s_ref.dtype  # compute dtype for MXU inputs (f32 or bf16)

    s = s_ref[...].astype(cdt)
    a = a_ref[...].astype(cdt)

    # Layer 1: split-K matmul replaces cat([state, action]) @ W1.
    h1 = (jnp.dot(s, w1s_ref[...], preferred_element_type=jnp.float32)
          + jnp.dot(a, w1a_ref[...], preferred_element_type=jnp.float32)
          + b1_ref[...])
    h1 = jnp.maximum(h1, 0.0)

    # Layer 2: the dominant 256x256 MXU matmul, f32 accumulation.
    h2 = (jnp.dot(h1.astype(cdt), w2_ref[...],
                  preferred_element_type=jnp.float32)
          + b2_ref[...])
    h2 = jnp.maximum(h2, 0.0)

    # Layer 3 (out_features = 1): VPU multiply + XLU lane reduction instead of
    # an N=1 MXU matmul.
    v = jnp.sum(h2 * w3r_ref[...].astype(jnp.float32), axis=-1, keepdims=True)
    v = v + b3_ref[...]
    o_ref[...] = v.astype(o_ref.dtype)


@functools.partial(jax.jit, static_argnames=("tile_b", "compute_dtype"))
def critic_discrete_forward(state, action, params, *, tile_b=512,
                            compute_dtype=jnp.float32):
    """state: (B, ds), action: (B, da). Returns (B, 1) Q-values."""
    state = state.astype(jnp.float32)
    action = action.astype(jnp.float32)
    B, ds = state.shape
    da = action.shape[1]

    w1, b1, w2, b2, w3, b3 = params
    H = w1.shape[1]  # hidden width (256)

    # Host-side, once: split W1 for the concat-free first layer; weights that
    # feed the MXU may be cast to bf16 (f32 accumulation is kept in-kernel).
    w1s = w1[:ds].astype(compute_dtype)
    w1a = w1[ds:].astype(compute_dtype)
    w2c = w2.astype(compute_dtype)
    w3r = w3.reshape(1, H).astype(jnp.float32)   # used on the VPU, keep f32
    b1r = b1.reshape(1, H).astype(jnp.float32)
    b2r = b2.reshape(1, H).astype(jnp.float32)
    b3r = b3.reshape(1, 1).astype(jnp.float32)

    # Batch tile: multiple of 8 sublanes; clamp for tiny batches, pad otherwise.
    tb = min(int(tile_b), _round_up(B, 8))
    tb = _round_up(tb, 8)
    padded_B = _round_up(B, tb)
    if padded_B != B:
        pad = padded_B - B
        state_p = jnp.pad(state, ((0, pad), (0, 0)))
        action_p = jnp.pad(action, ((0, pad), (0, 0)))
    else:
        state_p, action_p = state, action
    grid = (padded_B // tb,)

    const = lambda shape: pl.BlockSpec(shape, lambda i: (0, 0))

    flops = 2 * padded_B * (ds * H + da * H + H * H + H)
    bytes_accessed = (
        padded_B * (ds + da) * 4 + padded_B * 4            # inputs + output
        + (ds + da) * H * jnp.dtype(compute_dtype).itemsize  # w1
        + H * H * jnp.dtype(compute_dtype).itemsize          # w2
        + (3 * H + 1) * 4                                     # w3 row + biases
    )

    out = pl.pallas_call(
        critic_mlp_kernel,
        out_shape=jax.ShapeDtypeStruct((padded_B, 1), jnp.float32),
        grid=grid,
        in_specs=[
            pl.BlockSpec((tb, ds), lambda i: (i, 0)),   # state tile
            pl.BlockSpec((tb, da), lambda i: (i, 0)),   # action tile
            const((ds, H)),                             # w1_s (resident)
            const((da, H)),                             # w1_a (resident)
            const((1, H)),                              # b1
            const((H, H)),                              # w2 (resident)
            const((1, H)),                              # b2
            const((1, H)),                              # w3 row
            const((1, 1)),                              # b3
        ],
        out_specs=pl.BlockSpec((tb, 1), lambda i: (i, 0)),
        compiler_params=pltpu.CompilerParams(
            dimension_semantics=("parallel",)),
        cost_estimate=pl.CostEstimate(
            flops=flops, transcendentals=0, bytes_accessed=int(bytes_accessed)),
    )(state_p, action_p, w1s, w1a, b1r, w2c, b2r, w3r, b3r)

    return out[:B]


def init_params(key, ds, da, hidden=256):
    """Init mimicking nn.Linear default (uniform +-1/sqrt(fan_in)).

    Weights stored pre-transposed as (in_features, out_features).
    """
    din = ds + da
    keys = jax.random.split(key, 6)

    def lin(kw, kb, fan_in, fan_out):
        bound = 1.0 / jnp.sqrt(fan_in)
        w = jax.random.uniform(kw, (fan_in, fan_out), jnp.float32, -bound, bound)
        b = jax.random.uniform(kb, (fan_out,), jnp.float32, -bound, bound)
        return w, b

    w1, b1 = lin(keys[0], keys[1], din, hidden)
    w2, b2 = lin(keys[2], keys[3], hidden, hidden)
    w3, b3 = lin(keys[4], keys[5], hidden, 1)
    return (w1, b1, w2, b2, w3, b3)


def reference_forward(state, action, params):
    w1, b1, w2, b2, w3, b3 = params
    x = jnp.concatenate([state, action], axis=1)
    h = jax.nn.relu(x @ w1 + b1)
    h = jax.nn.relu(h @ w2 + b2)
    return h @ w3 + b3


if __name__ == "__main__":
    # Small synthetic env: observation_space.shape -> ds=16 (flattened),
    # action_space.n -> da=4.
    B, ds, da = 8, 16, 4

    key = jax.random.PRNGKey(0)
    k_state, k_action, k_params = jax.random.split(key, 3)

    state = jax.random.normal(k_state, (B, ds), jnp.float32)
    # One-hot actions, as typically fed to a discrete critic.
    act_idx = jax.random.randint(k_action, (B,), 0, da)
    action = jax.nn.one_hot(act_idx, da, dtype=jnp.float32)

    params = init_params(k_params, ds, da)
    v_ref = reference_forward(state, action, params)

    # f32 path (exact vs reference).
    v = critic_discrete_forward(state, action, params)
    v = jax.block_until_ready(v)
    assert v.shape == (B, 1)
    assert jnp.allclose(v, v_ref, atol=1e-5, rtol=1e-5)

    # bf16 MXU-input path (v6e/v7x fast path); f32 accumulation, loose tolerance.
    v_bf16 = critic_discrete_forward(state, action, params,
                                     compute_dtype=jnp.bfloat16)
    v_bf16 = jax.block_until_ready(v_bf16)
    assert jnp.allclose(v_bf16, v_ref, atol=5e-2, rtol=5e-2)

    print("KERNEL_OK")
</pallas_src>

<mosaic_0001>
module attributes {stable_mosaic.version = 11 : i64} {
  func.func @critic_mlp_kernel(%arg0: i32, %arg1: memref<8x16xf32, #tpu.memory_space<vmem>>, %arg2: memref<8x4xf32, #tpu.memory_space<vmem>>, %arg3: memref<16x256xf32, #tpu.memory_space<vmem>>, %arg4: memref<4x256xf32, #tpu.memory_space<vmem>>, %arg5: memref<1x256xf32, #tpu.memory_space<vmem>>, %arg6: memref<256x256xf32, #tpu.memory_space<vmem>>, %arg7: memref<1x256xf32, #tpu.memory_space<vmem>>, %arg8: memref<1x256xf32, #tpu.memory_space<vmem>>, %arg9: memref<1x1xf32, #tpu.memory_space<vmem>>, %arg10: memref<8x1xf32, #tpu.memory_space<vmem>>) attributes {dimension_semantics = [#tpu.dimension_semantics<parallel>], iteration_bounds = array<i64: 1>, scalar_prefetch = 0 : i64, scratch_operands = 0 : i64, tpu.core_type = #tpu.core_type<tc>, window_params = [{transform_indices = @transform_0, window_bounds = array<i64: 8, 16>}, {transform_indices = @transform_1, window_bounds = array<i64: 8, 4>}, {pipeline_mode = #tpu.pipeline_mode<synchronous>, transform_indices = @transform_2, window_bounds = array<i64: 16, 256>}, {pipeline_mode = #tpu.pipeline_mode<synchronous>, transform_indices = @transform_3, window_bounds = array<i64: 4, 256>}, {pipeline_mode = #tpu.pipeline_mode<synchronous>, transform_indices = @transform_4, window_bounds = array<i64: 1, 256>}, {pipeline_mode = #tpu.pipeline_mode<synchronous>, transform_indices = @transform_5, window_bounds = array<i64: 256, 256>}, {pipeline_mode = #tpu.pipeline_mode<synchronous>, transform_indices = @transform_6, window_bounds = array<i64: 1, 256>}, {pipeline_mode = #tpu.pipeline_mode<synchronous>, transform_indices = @transform_7, window_bounds = array<i64: 1, 256>}, {pipeline_mode = #tpu.pipeline_mode<synchronous>, transform_indices = @transform_8, window_bounds = array<i64: 1, 1>}, {transform_indices = @transform_9, window_bounds = array<i64: 8, 1>}]} {
    %c0 = arith.constant 0 : index
    %c0_0 = arith.constant 0 : index
    %0 = vector.load %arg1[%c0, %c0_0] : memref<8x16xf32, #tpu.memory_space<vmem>>, vector<8x16xf32>
    %c0_1 = arith.constant 0 : index
    %c0_2 = arith.constant 0 : index
    %1 = vector.load %arg2[%c0_1, %c0_2] : memref<8x4xf32, #tpu.memory_space<vmem>>, vector<8x4xf32>
    %c0_3 = arith.constant 0 : index
    %c0_4 = arith.constant 0 : index
    %2 = vector.load %arg3[%c0_3, %c0_4] : memref<16x256xf32, #tpu.memory_space<vmem>>, vector<16x256xf32>
    %cst = arith.constant dense<0.000000e+00> : vector<8x256xf32>
    %3 = tpu.matmul %0, %2, %cst {dimension_numbers = #tpu.dot_dimension_numbers<[1], [0], [0], [1], [0, 0, 1, 1], [], []>} : vector<8x16xf32>, vector<16x256xf32>, vector<8x256xf32> -> vector<8x256xf32>
    %c0_5 = arith.constant 0 : index
    %c0_6 = arith.constant 0 : index
    %4 = vector.load %arg4[%c0_5, %c0_6] : memref<4x256xf32, #tpu.memory_space<vmem>>, vector<4x256xf32>
    %cst_7 = arith.constant dense<0.000000e+00> : vector<8x256xf32>
    %5 = tpu.matmul %1, %4, %cst_7 {dimension_numbers = #tpu.dot_dimension_numbers<[1], [0], [0], [1], [0, 0, 1, 1], [], []>} : vector<8x4xf32>, vector<4x256xf32>, vector<8x256xf32> -> vector<8x256xf32>
    %6 = arith.addf %3, %5 : vector<8x256xf32>
    %c0_8 = arith.constant 0 : index
    %c0_9 = arith.constant 0 : index
    %7 = vector.load %arg5[%c0_8, %c0_9] : memref<1x256xf32, #tpu.memory_space<vmem>>, vector<1x256xf32>
    %8 = vector.broadcast %7 : vector<1x256xf32> to vector<8x256xf32>
    %9 = arith.addf %6, %8 : vector<8x256xf32>
    %cst_10 = arith.constant 0.000000e+00 : f32
    %10 = vector.broadcast %cst_10 : f32 to vector<8x256xf32>
    %11 = arith.maximumf %9, %10 : vector<8x256xf32>
    %c0_11 = arith.constant 0 : index
    %c0_12 = arith.constant 0 : index
    %12 = vector.load %arg6[%c0_11, %c0_12] : memref<256x256xf32, #tpu.memory_space<vmem>>, vector<256x256xf32>
    %cst_13 = arith.constant dense<0.000000e+00> : vector<8x256xf32>
    %13 = tpu.matmul %11, %12, %cst_13 {dimension_numbers = #tpu.dot_dimension_numbers<[1], [0], [0], [1], [0, 0, 1, 1], [], []>} : vector<8x256xf32>, vector<256x256xf32>, vector<8x256xf32> -> vector<8x256xf32>
    %c0_14 = arith.constant 0 : index
    %c0_15 = arith.constant 0 : index
    %14 = vector.load %arg7[%c0_14, %c0_15] : memref<1x256xf32, #tpu.memory_space<vmem>>, vector<1x256xf32>
    %15 = vector.broadcast %14 : vector<1x256xf32> to vector<8x256xf32>
    %16 = arith.addf %13, %15 : vector<8x256xf32>
    %cst_16 = arith.constant 0.000000e+00 : f32
    %17 = vector.broadcast %cst_16 : f32 to vector<8x256xf32>
    %18 = arith.maximumf %16, %17 : vector<8x256xf32>
    %c0_17 = arith.constant 0 : index
    %c0_18 = arith.constant 0 : index
    %19 = vector.load %arg8[%c0_17, %c0_18] : memref<1x256xf32, #tpu.memory_space<vmem>>, vector<1x256xf32>
    %20 = vector.broadcast %19 : vector<1x256xf32> to vector<8x256xf32>
    %21 = arith.mulf %18, %20 : vector<8x256xf32>
    %cst_19 = arith.constant dense<0.000000e+00> : vector<8xf32>
    %22 = vector.multi_reduction <add>, %21, %cst_19 [1] : vector<8x256xf32> to vector<8xf32>
    %23 = vector.shape_cast %22 : vector<8xf32> to vector<8x1xf32>
    %c0_20 = arith.constant 0 : index
    %c0_21 = arith.constant 0 : index
    %24 = vector.load %arg9[%c0_20, %c0_21] : memref<1x1xf32, #tpu.memory_space<vmem>>, vector<1x1xf32>
    %25 = vector.broadcast %24 : vector<1x1xf32> to vector<8x1xf32>
    %26 = arith.addf %23, %25 : vector<8x1xf32>
    %c0_22 = arith.constant 0 : index
    %c0_23 = arith.constant 0 : index
    %27 = vector.load %arg10[%c0_22, %c0_23] : memref<8x1xf32, #tpu.memory_space<vmem>>, vector<8x1xf32>
    tpu.vector_store %arg10[%c0_22, %c0_23], %26 {strides = array<i32>} : memref<8x1xf32, #tpu.memory_space<vmem>>, vector<8x1xf32>,
    return
  }
  func.func @transform_0(%arg0: i32) -> (i32, i32) {
    %c0_i32 = arith.constant 0 : i32
    %c0_i32_0 = arith.constant 0 : i32
    return %arg0, %c0_i32 : i32, i32
  }
  func.func @transform_1(%arg0: i32) -> (i32, i32) {
    %c0_i32 = arith.constant 0 : i32
    %c0_i32_0 = arith.constant 0 : i32
    return %arg0, %c0_i32 : i32, i32
  }
  func.func @transform_2(%arg0: i32) -> (i32, i32) {
    %c0_i32 = arith.constant 0 : i32
    %c0_i32_0 = arith.constant 0 : i32
    %c0_i32_1 = arith.constant 0 : i32
    return %c0_i32, %c0_i32_0 : i32, i32
  }
  func.func @transform_3(%arg0: i32) -> (i32, i32) {
    %c0_i32 = arith.constant 0 : i32
    %c0_i32_0 = arith.constant 0 : i32
    %c0_i32_1 = arith.constant 0 : i32
    return %c0_i32, %c0_i32_0 : i32, i32
  }
  func.func @transform_4(%arg0: i32) -> (i32, i32) {
    %c0_i32 = arith.constant 0 : i32
    %c0_i32_0 = arith.constant 0 : i32
    %c0_i32_1 = arith.constant 0 : i32
    return %c0_i32, %c0_i32_0 : i32, i32
  }
  func.func @transform_5(%arg0: i32) -> (i32, i32) {
    %c0_i32 = arith.constant 0 : i32
    %c0_i32_0 = arith.constant 0 : i32
    %c0_i32_1 = arith.constant 0 : i32
    return %c0_i32, %c0_i32_0 : i32, i32
  }
  func.func @transform_6(%arg0: i32) -> (i32, i32) {
    %c0_i32 = arith.constant 0 : i32
    %c0_i32_0 = arith.constant 0 : i32
    %c0_i32_1 = arith.constant 0 : i32
    return %c0_i32, %c0_i32_0 : i32, i32
  }
  func.func @transform_7(%arg0: i32) -> (i32, i32) {
    %c0_i32 = arith.constant 0 : i32
    %c0_i32_0 = arith.constant 0 : i32
    %c0_i32_1 = arith.constant 0 : i32
    return %c0_i32, %c0_i32_0 : i32, i32
  }
  func.func @transform_8(%arg0: i32) -> (i32, i32) {
    %c0_i32 = arith.constant 0 : i32
    %c0_i32_0 = arith.constant 0 : i32
    %c0_i32_1 = arith.constant 0 : i32
    return %c0_i32, %c0_i32_0 : i32, i32
  }
  func.func @transform_9(%arg0: i32) -> (i32, i32) {
    %c0_i32 = arith.constant 0 : i32
    %c0_i32_0 = arith.constant 0 : i32
    return %arg0, %c0_i32 : i32, i32
  }
}

</mosaic_0001>

<bundles_post_ra>
// kernel: critic_discrete_forward.1
= control target key start
LH: loop header
LB: loop body
LE: loop exit
PB: predicated region body
PF: predicated region fallthrough
CT: control target
= control target key end

     0   :  { %s617_s0 = inlined_call_operand.vmem [shape: f32[8,16], index: 0, kind: input, shape index: {}]   ;;  %s618_s1 = inlined_call_operand.vmem [shape: f32[8,4], index: 1, kind: input, shape index: {}]   ;;  %s619_s2 = inlined_call_operand.vmem [shape: f32[16,256], index: 2, kind: input, shape index: {}]   ;;  %s620_s3 = inlined_call_operand.vmem [shape: f32[4,256], index: 3, kind: input, shape index: {}]   ;;  %s621_s4 = inlined_call_operand.vmem [shape: f32[1,256], index: 4, kind: input, shape index: {}]   ;;  %s622_s5 = inlined_call_operand.hbm [shape: f32[256,256], index: 5, kind: input, shape index: {}]   ;;  %s623_s6 = inlined_call_operand.vmem [shape: f32[1,256], index: 6, kind: input, shape index: {}]   ;;  %s624_s7 = inlined_call_operand.vmem [shape: f32[1,256], index: 7, kind: input, shape index: {}]   ;;  %s625_s8 = inlined_call_operand.<no memory space> [shape: f32[1,1], index: 8, kind: input, shape index: {}]   ;;  %s626_s9 = inlined_call_operand.vmem [shape: f32[8,1], index: 9, kind: output, shape index: {}]  }
   0x1   :  { %v14_v0 = vstv %s625_s8 }
   0x2   :  { %15 = vst [vmem:[#allocation2] sm:$0x1] %v14_v0 }
   0x3   :  { %16 = vsyncpa [#allocation4], 0  ;;  %s513_s11 = smov [#allocation3]   ;;  %s489_s15 = scalar_lea.hbm %s622_s5, 8192 }
   0x4   :  { %s32_s12 = sshll.u32 %s513_s11, 4  ;;  %p490_p0 = scmp.ne.s32.totalorder %s622_s5, %s489_s15  ;;  %s33_s12 = int_to_ptr.vmem [resolvable:$true] %s32_s12 }
   0x5   :  { %p493_p1 = scmp.lt.u32.totalorder %s489_s15, %s622_s5 }
   0x7   :  { %p495_p2 = pnand %p493_p1, %p490_p0 }
   0x9   :  { %498 = shalt.err (!%p495_p2)
}
   0xa   :  { %s499_s8 = scalar_lea.vmem %s33_s12, 8192  ;;  %p504_p4 = scmp.lt.s32.totalorder %s33_s12, %s33_s12 }
   0xb   :  { %p500_p3 = scmp.ne.s32.totalorder %s33_s12, %s499_s8  ;;  %p505_p5 = scmp.lt.s32.totalorder %s499_s8, %s499_s8 }
   0xd   :  { %p506_p6 = por %p505_p5, %p504_p4 }
   0xf   :  { %p507_p7 = pnand %p506_p6, %p500_p3 }
  0x11   :  { %510 = shalt.err (!%p507_p7)
}
  0x12   :  { %s514_s20 = smov 256   ;;  %s515_s21 = smov 16  }
  0x13   :  { %38 = dma.hbm_to_vmem [thread:$0]  %s622_s5, 8192, %s33_s12, [#allocation4], %s514_s20, %s514_s20, %s515_s21  }
  0x14   :  { %511 = dma.done.wait [#allocation4], 8192  }
  0x15   :  { %512 = vsyncadd [#allocation4], 4294959104  ;;  %v516_v1 = vmov 0.0   ;;  %v54_v2 = vld [vmem:[%s620_s3] sm:$0xff]  ;;  %vm61_vm0 = vcmask 1043456   ;;  %v51_v3 = vld [vmem:[%s619_s2 + $0x8] sm:$0xff] }
  0x16   :  { %130 = vmatprep.mubr.f32.mxu0 %v516_v1  ;;  %v56_v4 = vcombine.high %v54_v2, %v54_v2  ;;  %v53_v5 = vld [vmem:[%s619_s2 + $0x18] sm:$0xff]  ;;  %v50_v6 = vld [vmem:[%s619_s2] sm:$0xff]  ;;  %v52_v7 = vld [vmem:[%s619_s2 + $0x10] sm:$0xff]  ;;  %vm57_vm1 = vcmask 31744   ;;  %vm137_vm2 = vcmask 130048   ;;  %vm402_vm3 = vcmask 7168  }
  0x17   :  { %v49_v8 = vld [vmem:[%s618_s1] sm:$0xff]  ;;  %v414_v9 = vpack.c.bf16 %v53_v5, %v51_v3  ;;  %v416_v10 = vpack.c.bf16 %v52_v7, %v50_v6  ;;  %v229_v11 = vld [vmem:[#allocation3 + $0x8] sm:$0xff]  ;;  %v230_v15 = vld [vmem:[#allocation3 + $0x10] sm:$0xff] }
  0x18   :  { %v231_v12 = vld [vmem:[#allocation3 + $0x18] sm:$0xff]  ;;  %409 = vmatprep.subr.msk.mxu0 %vm61_vm0, %v56_v4  ;;  %v228_v14 = vld [vmem:[#allocation3] sm:$0xff]  ;;  %v233_v16 = vld [vmem:[#allocation3 + $0x28] sm:$0xff] }
  0x19   :  { %v418_v13 = vpack.c.bf16 %v231_v12, %v229_v11  ;;  %410 = vmatpush1.msk.msra.mxu0 %vm61_vm0, %v54_v2  ;;  %v420_v17 = vpack.c.bf16 %v230_v15, %v228_v14  ;;  %v235_v18 = vld [vmem:[#allocation3 + $0x38] sm:$0xff]  ;;  %v232_v20 = vld [vmem:[#allocation3 + $0x20] sm:$0xff]  ;;  %v234_v21 = vld [vmem:[#allocation3 + $0x30] sm:$0xff] }
  0x1a   :  { %411 = vmatmul.mubr.msk.f32.vlgmr.msra.gmra.mrb[0].mxu0 %vm57_vm1, %v49_v8  ;;  %415 = vmatprep.subr.bf16.mxu0 %v414_v9  ;;  %v422_v19 = vpack.c.bf16 %v235_v18, %v233_v16  ;;  %v237_v22 = vld [vmem:[#allocation3 + $0x48] sm:$0xff]  ;;  %v239_v23 = vld [vmem:[#allocation3 + $0x58] sm:$0xff]  ;;  %v424_v24 = vpack.c.bf16 %v234_v21, %v232_v20  ;;  %v236_v26 = vld [vmem:[#allocation3 + $0x40] sm:$0xff] }
  0x1b   :  { %417 = vmatpush1.bf16.msra.mxu0 %v416_v10  ;;  %205 = vmatprep.mubr.f32.mxu0 %v516_v1  ;;  %v426_v25 = vpack.c.bf16 %v239_v23, %v237_v22  ;;  %v238_v27 = vld [vmem:[#allocation3 + $0x50] sm:$0xff]  ;;  %v48_v28 = vld [vmem:[%s617_s0] sm:$0xff]  ;;  %v241_v29 = vld [vmem:[#allocation3 + $0x68] sm:$0xff] }
  0x1c   :  { %419 = vmatprep.subr.bf16.mxu1 %v418_v13  ;;  %v243_v30 = vld [vmem:[#allocation3 + $0x78] sm:$0xff]  ;;  %v428_v31 = vpack.c.bf16 %v238_v27, %v236_v26  ;;  %v240_v33 = vld [vmem:[#allocation3 + $0x60] sm:$0xff]  ;;  %v242_v34 = vld [vmem:[#allocation3 + $0x70] sm:$0xff] }
  0x1d   :  { %421 = vmatpush1.bf16.msra.mxu1 %v420_v17  ;;  %v430_v32 = vpack.c.bf16 %v243_v30, %v241_v29  ;;  %v245_v35 = vld [vmem:[#allocation3 + $0x88] sm:$0xff]  ;;  %v247_v36 = vld [vmem:[#allocation3 + $0x98] sm:$0xff]  ;;  %v432_v37 = vpack.c.bf16 %v242_v34, %v240_v33  ;;  %v244_v39 = vld [vmem:[#allocation3 + $0x80] sm:$0xff] }
  0x1e   :  { %423 = vmatprep.subr.bf16.mxu1 %v422_v19  ;;  %v434_v38 = vpack.c.bf16 %v247_v36, %v245_v35  ;;  %v246_v40 = vld [vmem:[#allocation3 + $0x90] sm:$0xff]  ;;  %v249_v41 = vld [vmem:[#allocation3 + $0xa8] sm:$0xff]  ;;  %v251_v42 = vld [vmem:[#allocation3 + $0xb8] sm:$0xff] }
  0x1f   :  { %v436_v43 = vpack.c.bf16 %v246_v40, %v244_v39  ;;  %v438_v44 = vpack.c.bf16 %v251_v42, %v249_v41  ;;  %v248_v45 = vld [vmem:[#allocation3 + $0xa0] sm:$0xff]  ;;  %v250_v46 = vld [vmem:[#allocation3 + $0xb0] sm:$0xff]  ;;  %v253_v47 = vld [vmem:[#allocation3 + $0xc8] sm:$0xff] }
  0x20   :  { %v255_v48 = vld [vmem:[#allocation3 + $0xd8] sm:$0xff]  ;;  %v440_v49 = vpack.c.bf16 %v250_v46, %v248_v45  ;;  %v252_v51 = vld [vmem:[#allocation3 + $0xc0] sm:$0xff]  ;;  %v254_v52 = vld [vmem:[#allocation3 + $0xd0] sm:$0xff] }
  0x21   :  { %425 = vmatpush1.bf16.msra.mxu1 %v424_v24  ;;  %v442_v50 = vpack.c.bf16 %v255_v48, %v253_v47  ;;  %v257_v53 = vld [vmem:[#allocation3 + $0xe8] sm:$0xff]  ;;  %v259_v54 = vld [vmem:[#allocation3 + $0xf8] sm:$0xff]  ;;  %v444_v55 = vpack.c.bf16 %v254_v52, %v252_v51  ;;  %v256_v57 = vld [vmem:[#allocation3 + $0xe0] sm:$0xff] }
  0x22   :  { %412 = vmatmul.mubr.msk.f32.vlgmr.msra.gmra.mrb[0].mxu0 %vm137_vm2, %v48_v28  ;;  %427 = vmatprep.subr.bf16.mxu1 %v426_v25  ;;  %v446_v56 = vpack.c.bf16 %v259_v54, %v257_v53  ;;  %v258_v58 = vld [vmem:[#allocation3 + $0xf0] sm:$0xff]  ;;  %v261_v59 = vld [vmem:[#allocation3 + $0x108] sm:$0xff]  ;;  %v263_v60 = vld [vmem:[#allocation3 + $0x118] sm:$0xff] }
  0x23   :  { %v448_v61 = vpack.c.bf16 %v258_v58, %v256_v57  ;;  %v450_v62 = vpack.c.bf16 %v263_v60, %v261_v59  ;;  %v260_v63 = vld [vmem:[#allocation3 + $0x100] sm:$0xff]  ;;  %v262_v0 = vld [vmem:[#allocation3 + $0x110] sm:$0xff]  ;;  %v265_v1 = vld [vmem:[#allocation3 + $0x128] sm:$0xff] }
  0x24   :  { %v267_v2 = vld [vmem:[#allocation3 + $0x138] sm:$0xff]  ;;  %v452_v3 = vpack.c.bf16 %v262_v0, %v260_v63  ;;  %v264_v5 = vld [vmem:[#allocation3 + $0x120] sm:$0xff]  ;;  %v266_v6 = vld [vmem:[#allocation3 + $0x130] sm:$0xff] }
  0x25   :  { %429 = vmatpush1.bf16.msra.mxu1 %v428_v31  ;;  %v454_v4 = vpack.c.bf16 %v267_v2, %v265_v1  ;;  %v269_v7 = vld [vmem:[#allocation3 + $0x148] sm:$0xff]  ;;  %v271_v8 = vld [vmem:[#allocation3 + $0x158] sm:$0xff]  ;;  %v456_v9 = vpack.c.bf16 %v266_v6, %v264_v5  ;;  %v268_v11 = vld [vmem:[#allocation3 + $0x140] sm:$0xff] }
  0x26   :  { %431 = vmatprep.subr.bf16.mxu1 %v430_v32  ;;  %v458_v10 = vpack.c.bf16 %v271_v8, %v269_v7  ;;  %v270_v12 = vld [vmem:[#allocation3 + $0x150] sm:$0xff]  ;;  %v273_v13 = vld [vmem:[#allocation3 + $0x168] sm:$0xff]  ;;  %v275_v14 = vld [vmem:[#allocation3 + $0x178] sm:$0xff] }
  0x27   :  { %v460_v15 = vpack.c.bf16 %v270_v12, %v268_v11  ;;  %v462_v16 = vpack.c.bf16 %v275_v14, %v273_v13  ;;  %v272_v17 = vld [vmem:[#allocation3 + $0x160] sm:$0xff]  ;;  %v274_v18 = vld [vmem:[#allocation3 + $0x170] sm:$0xff]  ;;  %v277_v19 = vld [vmem:[#allocation3 + $0x188] sm:$0xff] }
  0x28   :  { %v279_v20 = vld [vmem:[#allocation3 + $0x198] sm:$0xff]  ;;  %v464_v21 = vpack.c.bf16 %v274_v18, %v272_v17  ;;  %v276_v23 = vld [vmem:[#allocation3 + $0x180] sm:$0xff]  ;;  %v278_v24 = vld [vmem:[#allocation3 + $0x190] sm:$0xff] }
  0x29   :  { %433 = vmatpush1.bf16.msra.mxu1 %v432_v37  ;;  %v466_v22 = vpack.c.bf16 %v279_v20, %v277_v19  ;;  %v281_v25 = vld [vmem:[#allocation3 + $0x1a8] sm:$0xff]  ;;  %v283_v26 = vld [vmem:[#allocation3 + $0x1b8] sm:$0xff]  ;;  %v468_v27 = vpack.c.bf16 %v278_v24, %v276_v23  ;;  %v280_v29 = vld [vmem:[#allocation3 + $0x1a0] sm:$0xff] }
  0x2a   :  { %435 = vmatprep.subr.bf16.mxu1 %v434_v38  ;;  %v470_v28 = vpack.c.bf16 %v283_v26, %v281_v25  ;;  %v282_v30 = vld [vmem:[#allocation3 + $0x1b0] sm:$0xff]  ;;  %v285_v31 = vld [vmem:[#allocation3 + $0x1c8] sm:$0xff]  ;;  %v287_v32 = vld [vmem:[#allocation3 + $0x1d8] sm:$0xff] }
  0x2b   :  { %v472_v33 = vpack.c.bf16 %v282_v30, %v280_v29  ;;  %v474_v34 = vpack.c.bf16 %v287_v32, %v285_v31  ;;  %v284_v35 = vld [vmem:[#allocation3 + $0x1c0] sm:$0xff]  ;;  %v286_v36 = vld [vmem:[#allocation3 + $0x1d0] sm:$0xff]  ;;  %v289_v38 = vld [vmem:[#allocation3 + $0x1e8] sm:$0xff] }
  0x2c   :  { %v476_v37 = vpack.c.bf16 %v286_v36, %v284_v35  ;;  %v291_v39 = vld [vmem:[#allocation3 + $0x1f8] sm:$0xff]  ;;  %v288_v41 = vld [vmem:[#allocation3 + $0x1e0] sm:$0xff]  ;;  %v290_v42 = vld [vmem:[#allocation3 + $0x1f0] sm:$0xff] }
  0x2d   :  { %437 = vmatpush1.bf16.msra.mxu1 %v436_v43  ;;  %v478_v40 = vpack.c.bf16 %v291_v39, %v289_v38  ;;  %v480_v43 = vpack.c.bf16 %v290_v42, %v288_v41  ;;  %v212_v47 = vld [vmem:[%s621_s4] sm:$0x3] }
  0x2e   :  { %439 = vmatprep.subr.bf16.mxu1 %v438_v44  ;;  %v214_v44 = vlaneseq  ;;  %v292_v57 = vld [vmem:[%s623_s6] sm:$0x3] }
  0x2f   :  { %v377_v60 = vld [vmem:[%s624_s7] sm:$0x3] }
  0x30   :  { %v215_v45 = vshrl.u32 %v214_v44, 7  ;;  %v413_v8 = vld [vmem:[#allocation2] ss:$0 sm:$0xff] }
  0x31   :  { %441 = vmatpush1.bf16.msra.mxu1 %v440_v49 }
  0x32   :  { %443 = vmatprep.subr.bf16.mxu1 %v442_v50  ;;  %v216_v46 = vsub.s32 0, %v215_v45  ;;  %v220_v48 = vsub.s32 1, %v215_v45 }
  0x34   :  { %v217_v49 = vrot.slane %v212_v47, %v216_v46  ;;  %v221_v50 = vrot.slane %v212_v47, %v220_v48  ;;  %v297_v58 = vrot.slane %v292_v57, %v216_v46  ;;  %v301_v59 = vrot.slane %v292_v57, %v220_v48 }
  0x35   :  { %445 = vmatpush1.bf16.msra.mxu1 %v444_v55  ;;  %v382_v0 = vrot.slane %v377_v60, %v216_v46  ;;  %v386_v2 = vrot.slane %v377_v60, %v220_v48 }
  0x36   :  { %447 = vmatprep.subr.bf16.mxu1 %v446_v56 }
  0x39   :  { %449 = vmatpush1.bf16.msra.mxu1 %v448_v61 }
  0x3a   :  { %451 = vmatprep.subr.bf16.mxu1 %v450_v62 }
  0x3d   :  { %453 = vmatpush1.bf16.msra.mxu1 %v452_v3 }
  0x3e   :  { %455 = vmatprep.subr.bf16.mxu1 %v454_v4 }
  0x41   :  { %457 = vmatpush1.bf16.msra.mxu1 %v456_v9 }
  0x42   :  { %459 = vmatprep.subr.bf16.mxu1 %v458_v10 }
  0x45   :  { %461 = vmatpush1.bf16.msra.mxu1 %v460_v15 }
  0x46   :  { %463 = vmatprep.subr.bf16.mxu1 %v462_v16 }
  0x49   :  { %465 = vmatpush1.bf16.msra.mxu1 %v464_v21 }
  0x4a   :  { %467 = vmatprep.subr.bf16.mxu1 %v466_v22 }
  0x4d   :  { %469 = vmatpush1.bf16.msra.mxu1 %v468_v27 }
  0x4e   :  { %471 = vmatprep.subr.bf16.mxu1 %v470_v28 }
  0x51   :  { %473 = vmatpush1.bf16.msra.mxu1 %v472_v33 }
  0x52   :  { %475 = vmatprep.subr.bf16.mxu1 %v474_v34 }
  0x55   :  { %477 = vmatpush1.bf16.msra.mxu1 %v476_v37 }
  0x56   :  { %479 = vmatprep.subr.bf16.mxu1 %v478_v40 }
  0x59   :  { %481 = vmatpush1.bf16.msra.mxu1 %v480_v43 }
  0xf5   :  { %v207_v51 = vpop.f32.mrb[0].mxu0 }
  0xf6   :  { %v224_v52 = vadd.f32 %v217_v49, %v207_v51  ;;  %v209_v53 = vpop.f32.mrb[1].mxu0 }
  0xf7   :  { %v225_v54 = vadd.f32 %v221_v50, %v209_v53 }
  0xf8   :  { %v226_v56 = vmax.f32 %v224_v52, 0.0 }
  0xf9   :  { %v227_v55 = vmax.f32 %v225_v54, 0.0 }
  0xfb   :  { %368 = vmatprep.mubr.f32.mxu1 %v227_v55 }
  0xfc   :  { %369 = vmatmul.mubr.f32.vlgmr.msra.gmra.mrb[0].mxu1 %v226_v56 }
 0x1cf   :  { %v370_v61 = vpop.f32.mrb[0].mxu1 }
 0x1d0   :  { %v371_v62 = vadd.f32 %v370_v61, %v297_v58  ;;  %v372_v63 = vpop.f32.mrb[1].mxu1 }
 0x1d1   :  { %v373_v1 = vadd.f32 %v372_v63, %v301_v59 }
 0x1d2   :  { %v375_v3 = vmax.f32 %v371_v62, 0.0 }
 0x1d3   :  { %v376_v4 = vmax.f32 %v373_v1, 0.0 }
 0x1d4   :  { %v389_v5 = vmul.f32 %v382_v0, %v375_v3 }
 0x1d5   :  { %v390_v6 = vmul.f32 %v386_v2, %v376_v4 }
 0x1d7   :  { %v391_v7 = vadd.f32 %v390_v6, %v389_v5 }
 0x1d9   :  { %392 = vadd.xlane.f32.xlu0 %v391_v7 }
 0x266   :  { %v393_v9 = vpop.xlane.xlu0 %392 }
 0x267   :  { %v401_v10 = vadd.f32 %v413_v8, %v393_v9 }
 0x269   :  { %403 = vst.msk [vmem:[%s626_s9] sm:$0xff] %vm402_vm3, %v401_v10 }
 0x26a   :  { %408 = vsyncpa [#allocation4], 1 }

</bundles_post_ra>
